<compile_context>
chip_gen: v7x
topology: tpu7x:2x2x1
jax: 0.10.0
libtpu: 0.0.40
codegen_flags: <defaults>
</compile_context>

<pallas_src>
import functools

import jax
import jax.numpy as jnp
from jax.experimental import pallas as pl
from jax.experimental.pallas import tpu as pltpu


# ---------------------------------------------------------------------------
# Fused two-phase kernel
# ---------------------------------------------------------------------------
def _gin_fused_kernel(a_ref, x_ref, w1_ref, b1_ref, w2_ref, b2_ref,
                      o_ref, z1_ref):
    """phase 0: write relu(GINConv1) row tile into the VMEM z1 scratch.
       phase 1: read the full z1 scratch, write normalized GINConv2 row tile."""
    phase = pl.program_id(0)
    i = pl.program_id(1)
    tn = a_ref.shape[0]

    @pl.when(phase == 0)
    def _layer1():
        agg = jnp.dot(a_ref[...], x_ref[...], preferred_element_type=jnp.float32)
        z = jnp.dot(agg, w1_ref[...], preferred_element_type=jnp.float32) + b1_ref[...]
        row0 = pl.multiple_of(i * tn, tn)              # sublane-aligned tile offset
        z1_ref[pl.ds(row0, tn), :] = jnp.maximum(z, 0.0)
        # dropout(p=0.4) is identity at inference.

    @pl.when(phase == 1)
    def _layer2():
        agg = jnp.dot(a_ref[...], z1_ref[...], preferred_element_type=jnp.float32)
        z = jnp.dot(agg, w2_ref[...], preferred_element_type=jnp.float32) + b2_ref[...]
        norm = jnp.sqrt(jnp.sum(z * z, axis=-1, keepdims=True))
        o_ref[...] = z / jnp.maximum(norm, 1e-12)       # F.normalize(p=2, dim=-1)


def _pick_row_tile(n, target=512):
    """Largest multiple-of-8 divisor of n that is <= target (or n itself if small)."""
    if n <= target:
        return n
    for t in range(target, 7, -8):
        if n % t == 0:
            return t
    return n


# ---------------------------------------------------------------------------
# Wrapper: full GIN forward (inference)
# ---------------------------------------------------------------------------
@functools.partial(jax.jit, static_argnames=("num_nodes", "eps"))
def gin_forward(x, edge_index, w1, b1, w2, b2, *, num_nodes, eps=0.0):
    """x: (N, F_in) f32, edge_index: (2, E) int32 [src; dst]. Returns (N, F_out)."""
    n = num_nodes
    f_in = x.shape[1]
    hidden = w1.shape[1]
    f_out = w2.shape[1]
    src, dst = edge_index[0], edge_index[1]

    # Plain-JAX glue: dense "aggregation + self" operator  Ahat = A + (1+eps)*I,
    # with A[i, j] = number of edges j -> i (matches GINConv sum aggregation).
    ahat = jnp.zeros((n, n), jnp.float32).at[dst, src].add(1.0)
    diag = jnp.arange(n)
    ahat = ahat.at[diag, diag].add(1.0 + eps)

    tn = _pick_row_tile(n)
    assert n % tn == 0, "node count must be a multiple of the row tile"
    n_tiles = n // tn

    grid_spec = pltpu.PrefetchScalarGridSpec(
        num_scalar_prefetch=0,
        grid=(2, n_tiles),                                        # (layer phase, row tile)
        in_specs=[
            pl.BlockSpec((tn, n), lambda p, i: (i, 0)),           # Ahat row tile
            pl.BlockSpec((n, f_in), lambda p, i: (0, 0)),         # x       (VMEM resident)
            pl.BlockSpec((f_in, hidden), lambda p, i: (0, 0)),    # W1      (VMEM resident)
            pl.BlockSpec((1, hidden), lambda p, i: (0, 0)),       # b1
            pl.BlockSpec((hidden, f_out), lambda p, i: (0, 0)),   # W2      (VMEM resident)
            pl.BlockSpec((1, f_out), lambda p, i: (0, 0)),        # b2
        ],
        # Phase 0 pins the output block index to 0 (nothing flushed while the
        # block is never written); phase 1 writes each lane-dense tile once.
        out_specs=pl.BlockSpec((tn, f_out), lambda p, i: (p * i, 0)),
        scratch_shapes=[pltpu.VMEM((n, hidden), jnp.float32)],    # z1 never leaves VMEM
    )

    return pl.pallas_call(
        _gin_fused_kernel,
        out_shape=jax.ShapeDtypeStruct((n, f_out), jnp.float32),
        grid_spec=grid_spec,
        compiler_params=pltpu.CompilerParams(
            # Phase 1 consumes the full z1 scratch written across all phase-0
            # tiles, so both grid axes carry dependencies -> sequential.
            dimension_semantics=("arbitrary", "arbitrary"),
            # Headroom for double-buffered Ahat row tiles; raise if n/tn grow.
            vmem_limit_bytes=64 * 1024 * 1024,
        ),
    )(ahat, x, w1, b1, w2, b2)


# ---------------------------------------------------------------------------
# Demo / self-check
# ---------------------------------------------------------------------------
if __name__ == "__main__":
    # Small deterministic setup consistent with GIN(input_dim, hidden_dim, output_dim).
    num_nodes = 64
    num_edges = 256
    input_dim, hidden_dim, output_dim = 16, 128, 128   # lane-dense hidden/output dims
    eps = 0.0                                          # GINConv default

    key = jax.random.PRNGKey(0)
    k_x, k_e1, k_e2, k_w1, k_b1, k_w2, k_b2 = jax.random.split(key, 7)

    x = jax.random.normal(k_x, (num_nodes, input_dim), dtype=jnp.float32)
    src = jax.random.randint(k_e1, (num_edges,), 0, num_nodes, dtype=jnp.int32)
    dst = jax.random.randint(k_e2, (num_edges,), 0, num_nodes, dtype=jnp.int32)
    edge_index = jnp.stack([src, dst], axis=0)

    # Linear weights stored as (in, out)  (== PyTorch weight.T), Kaiming-ish init.
    std1 = (2.0 / (input_dim + hidden_dim)) ** 0.5
    std2 = (2.0 / (hidden_dim + output_dim)) ** 0.5
    w1 = std1 * jax.random.normal(k_w1, (input_dim, hidden_dim), dtype=jnp.float32)
    b1 = 0.1 * jax.random.normal(k_b1, (1, hidden_dim), dtype=jnp.float32)
    w2 = std2 * jax.random.normal(k_w2, (hidden_dim, output_dim), dtype=jnp.float32)
    b2 = 0.1 * jax.random.normal(k_b2, (1, output_dim), dtype=jnp.float32)

    out = gin_forward(x, edge_index, w1, b1, w2, b2, num_nodes=num_nodes, eps=eps)
    jax.block_until_ready(out)

    # Pure-JAX reference using scatter-add aggregation (no dense adjacency).
    agg1 = jnp.zeros((num_nodes, input_dim), jnp.float32).at[dst].add(x[src])
    h1 = (1.0 + eps) * x + agg1
    z1 = jax.nn.relu(h1 @ w1 + b1)
    agg2 = jnp.zeros((num_nodes, hidden_dim), jnp.float32).at[dst].add(z1[src])
    h2 = (1.0 + eps) * z1 + agg2
    z2 = h2 @ w2 + b2
    ref = z2 / jnp.maximum(jnp.linalg.norm(z2, axis=-1, keepdims=True), 1e-12)

    assert out.shape == (num_nodes, output_dim)
    assert jnp.allclose(out, ref, atol=5e-3, rtol=5e-3), (
        float(jnp.max(jnp.abs(out - ref)))
    )

    print("KERNEL_OK")
</pallas_src>

<mosaic_0001>
module attributes {stable_mosaic.version = 11 : i64} {
  func.func private @main(%arg0: i32) attributes {dimension_semantics = [#tpu.dimension_semantics<core_parallel>], iteration_bounds = array<i64: 2>, tpu.core_type = #tpu.core_type<sc_scalar_subcore>, window_params = []} {
    return
  }
}

module attributes {stable_mosaic.version = 11 : i64} {
  func.func private @main(%arg0: i32) attributes {dimension_semantics = [#tpu.dimension_semantics<core_parallel>], iteration_bounds = array<i64: 2>, tpu.core_type = #tpu.core_type<sc_scalar_subcore>, window_params = []} {
    return
  }
}

module attributes {stable_mosaic.version = 11 : i64} {
  func.func @_gin_fused_kernel(%arg0: i32, %arg1: i32, %arg2: memref<64x64xf32, #tpu.memory_space<vmem>>, %arg3: memref<64x16xf32, #tpu.memory_space<vmem>>, %arg4: memref<16x128xf32, #tpu.memory_space<vmem>>, %arg5: memref<1x128xf32, #tpu.memory_space<vmem>>, %arg6: memref<128x128xf32, #tpu.memory_space<vmem>>, %arg7: memref<1x128xf32, #tpu.memory_space<vmem>>, %arg8: memref<64x128xf32, #tpu.memory_space<vmem>>, %arg9: memref<64x128xf32, #tpu.memory_space<vmem>>) attributes {dimension_semantics = [#tpu.dimension_semantics<arbitrary>, #tpu.dimension_semantics<arbitrary>], iteration_bounds = array<i64: 2, 1>, scalar_prefetch = 0 : i64, scratch_operands = 1 : i64, tpu.core_type = #tpu.core_type<tc>, window_params = [{transform_indices = @transform_0, window_bounds = array<i64: 64, 64>}, {pipeline_mode = #tpu.pipeline_mode<synchronous>, transform_indices = @transform_1, window_bounds = array<i64: 64, 16>}, {pipeline_mode = #tpu.pipeline_mode<synchronous>, transform_indices = @transform_2, window_bounds = array<i64: 16, 128>}, {pipeline_mode = #tpu.pipeline_mode<synchronous>, transform_indices = @transform_3, window_bounds = array<i64: 1, 128>}, {pipeline_mode = #tpu.pipeline_mode<synchronous>, transform_indices = @transform_4, window_bounds = array<i64: 128, 128>}, {pipeline_mode = #tpu.pipeline_mode<synchronous>, transform_indices = @transform_5, window_bounds = array<i64: 1, 128>}, {transform_indices = @transform_6, window_bounds = array<i64: 64, 128>}]} {
    %c0_i32 = arith.constant 0 : i32
    %0 = arith.cmpi eq, %arg0, %c0_i32 : i32
    %1 = arith.extui %0 : i1 to i32
    %c0_i32_0 = arith.constant 0 : i32
    %2 = arith.cmpi ne, %1, %c0_i32_0 : i32
    scf.if %2 {
      %c0 = arith.constant 0 : index
      %c0_2 = arith.constant 0 : index
      %6 = vector.load %arg2[%c0, %c0_2] : memref<64x64xf32, #tpu.memory_space<vmem>>, vector<64x64xf32>
      %c0_3 = arith.constant 0 : index
      %c0_4 = arith.constant 0 : index
      %7 = vector.load %arg3[%c0_3, %c0_4] : memref<64x16xf32, #tpu.memory_space<vmem>>, vector<64x16xf32>
      %cst = arith.constant dense<0.000000e+00> : vector<64x16xf32>
      %8 = tpu.matmul %6, %7, %cst {dimension_numbers = #tpu.dot_dimension_numbers<[1], [0], [0], [1], [0, 0, 1, 1], [], []>} : vector<64x64xf32>, vector<64x16xf32>, vector<64x16xf32> -> vector<64x16xf32>
      %c0_5 = arith.constant 0 : index
      %c0_6 = arith.constant 0 : index
      %9 = vector.load %arg4[%c0_5, %c0_6] : memref<16x128xf32, #tpu.memory_space<vmem>>, vector<16x128xf32>
      %cst_7 = arith.constant dense<0.000000e+00> : vector<64x128xf32>
      %10 = tpu.matmul %8, %9, %cst_7 {dimension_numbers = #tpu.dot_dimension_numbers<[1], [0], [0], [1], [0, 0, 1, 1], [], []>} : vector<64x16xf32>, vector<16x128xf32>, vector<64x128xf32> -> vector<64x128xf32>
      %c0_8 = arith.constant 0 : index
      %c0_9 = arith.constant 0 : index
      %11 = vector.load %arg5[%c0_8, %c0_9] : memref<1x128xf32, #tpu.memory_space<vmem>>, vector<1x128xf32>
      %12 = vector.broadcast %11 : vector<1x128xf32> to vector<64x128xf32>
      %13 = arith.addf %10, %12 : vector<64x128xf32>
      %c64_i32 = arith.constant 64 : i32
      %14 = arith.muli %arg1, %c64_i32 : i32
      %15 = tpu.assume_multiple %14, 64 : i32
      %cst_10 = arith.constant 0.000000e+00 : f32
      %16 = vector.broadcast %cst_10 : f32 to vector<64x128xf32>
      %17 = arith.maximumf %13, %16 : vector<64x128xf32>
      %18 = arith.index_cast %15 : i32 to index
      %c0_11 = arith.constant 0 : index
      %19 = vector.load %arg9[%18, %c0_11] : memref<64x128xf32, #tpu.memory_space<vmem>>, vector<64x128xf32>
      tpu.vector_store %arg9[%18, %c0_11], %17 {strides = array<i32>} : memref<64x128xf32, #tpu.memory_space<vmem>>, vector<64x128xf32>,
    } else {
    }
    %c1_i32 = arith.constant 1 : i32
    %3 = arith.cmpi eq, %arg0, %c1_i32 : i32
    %4 = arith.extui %3 : i1 to i32
    %c0_i32_1 = arith.constant 0 : i32
    %5 = arith.cmpi ne, %4, %c0_i32_1 : i32
    scf.if %5 {
      %c0 = arith.constant 0 : index
      %c0_2 = arith.constant 0 : index
      %6 = vector.load %arg2[%c0, %c0_2] : memref<64x64xf32, #tpu.memory_space<vmem>>, vector<64x64xf32>
      %c0_3 = arith.constant 0 : index
      %c0_4 = arith.constant 0 : index
      %7 = vector.load %arg9[%c0_3, %c0_4] : memref<64x128xf32, #tpu.memory_space<vmem>>, vector<64x128xf32>
      %cst = arith.constant dense<0.000000e+00> : vector<64x128xf32>
      %8 = tpu.matmul %6, %7, %cst {dimension_numbers = #tpu.dot_dimension_numbers<[1], [0], [0], [1], [0, 0, 1, 1], [], []>} : vector<64x64xf32>, vector<64x128xf32>, vector<64x128xf32> -> vector<64x128xf32>
      %c0_5 = arith.constant 0 : index
      %c0_6 = arith.constant 0 : index
      %9 = vector.load %arg6[%c0_5, %c0_6] : memref<128x128xf32, #tpu.memory_space<vmem>>, vector<128x128xf32>
      %cst_7 = arith.constant dense<0.000000e+00> : vector<64x128xf32>
      %10 = tpu.matmul %8, %9, %cst_7 {dimension_numbers = #tpu.dot_dimension_numbers<[1], [0], [0], [1], [0, 0, 1, 1], [], []>} : vector<64x128xf32>, vector<128x128xf32>, vector<64x128xf32> -> vector<64x128xf32>
      %c0_8 = arith.constant 0 : index
      %c0_9 = arith.constant 0 : index
      %11 = vector.load %arg7[%c0_8, %c0_9] : memref<1x128xf32, #tpu.memory_space<vmem>>, vector<1x128xf32>
      %12 = vector.broadcast %11 : vector<1x128xf32> to vector<64x128xf32>
      %13 = arith.addf %10, %12 : vector<64x128xf32>
      %14 = arith.mulf %13, %13 : vector<64x128xf32>
      %cst_10 = arith.constant dense<0.000000e+00> : vector<64xf32>
      %15 = vector.multi_reduction <add>, %14, %cst_10 [1] : vector<64x128xf32> to vector<64xf32>
      %16 = vector.shape_cast %15 : vector<64xf32> to vector<64x1xf32>
      %17 = math.sqrt %16 : vector<64x1xf32>
      %cst_11 = arith.constant 9.99999996E-13 : f32
      %18 = vector.broadcast %cst_11 : f32 to vector<64x1xf32>
      %19 = arith.maximumf %17, %18 : vector<64x1xf32>
      %20 = vector.broadcast %19 : vector<64x1xf32> to vector<64x128xf32>
      %21 = arith.divf %13, %20 : vector<64x128xf32>
      %c0_12 = arith.constant 0 : index
      %c0_13 = arith.constant 0 : index
      %22 = vector.load %arg8[%c0_12, %c0_13] : memref<64x128xf32, #tpu.memory_space<vmem>>, vector<64x128xf32>
      tpu.vector_store %arg8[%c0_12, %c0_13], %21 {strides = array<i32>} : memref<64x128xf32, #tpu.memory_space<vmem>>, vector<64x128xf32>,
    } else {
    }
    return
  }
  func.func @transform_0(%arg0: i32, %arg1: i32) -> (i32, i32) {
    %c0_i32 = arith.constant 0 : i32
    %c0_i32_0 = arith.constant 0 : i32
    return %arg1, %c0_i32 : i32, i32
  }
  func.func @transform_1(%arg0: i32, %arg1: i32) -> (i32, i32) {
    %c0_i32 = arith.constant 0 : i32
    %c0_i32_0 = arith.constant 0 : i32
    %c0_i32_1 = arith.constant 0 : i32
    return %c0_i32, %c0_i32_0 : i32, i32
  }
  func.func @transform_2(%arg0: i32, %arg1: i32) -> (i32, i32) {
    %c0_i32 = arith.constant 0 : i32
    %c0_i32_0 = arith.constant 0 : i32
    %c0_i32_1 = arith.constant 0 : i32
    return %c0_i32, %c0_i32_0 : i32, i32
  }
  func.func @transform_3(%arg0: i32, %arg1: i32) -> (i32, i32) {
    %c0_i32 = arith.constant 0 : i32
    %c0_i32_0 = arith.constant 0 : i32
    %c0_i32_1 = arith.constant 0 : i32
    return %c0_i32, %c0_i32_0 : i32, i32
  }
  func.func @transform_4(%arg0: i32, %arg1: i32) -> (i32, i32) {
    %c0_i32 = arith.constant 0 : i32
    %c0_i32_0 = arith.constant 0 : i32
    %c0_i32_1 = arith.constant 0 : i32
    return %c0_i32, %c0_i32_0 : i32, i32
  }
  func.func @transform_5(%arg0: i32, %arg1: i32) -> (i32, i32) {
    %c0_i32 = arith.constant 0 : i32
    %c0_i32_0 = arith.constant 0 : i32
    %c0_i32_1 = arith.constant 0 : i32
    return %c0_i32, %c0_i32_0 : i32, i32
  }
  func.func @transform_6(%arg0: i32, %arg1: i32) -> (i32, i32) {
    %0 = arith.muli %arg0, %arg1 : i32
    %c0_i32 = arith.constant 0 : i32
    %c0_i32_0 = arith.constant 0 : i32
    return %0, %c0_i32 : i32, i32
  }
}

</mosaic_0001>

<bundles_post_ra>
// kernel: gin_forward.1
= control target key start
LH: loop header
LB: loop body
LE: loop exit
PB: predicated region body
PF: predicated region fallthrough
CT: control target
= control target key end

     0   :  { %11 = vsyncpa [#allocation4], 0  ;;  %s2198_s0 = inlined_call_operand.hbm [shape: f32[64,64], index: 0, kind: input, shape index: {}]   ;;  %s2199_s1 = inlined_call_operand.hbm [shape: f32[64,16], index: 1, kind: input, shape index: {}]   ;;  %s2200_s2 = inlined_call_operand.hbm [shape: f32[16,128], index: 2, kind: input, shape index: {}]   ;;  %s2201_s3 = inlined_call_operand.hbm [shape: f32[1,128], index: 3, kind: input, shape index: {}]   ;;  %s2202_s4 = inlined_call_operand.hbm [shape: f32[128,128], index: 4, kind: input, shape index: {}]   ;;  %s2203_s5 = inlined_call_operand.hbm [shape: f32[1,128], index: 5, kind: input, shape index: {}]   ;;  %s2204_s6 = inlined_call_operand.hbm [shape: f32[64,128], index: 6, kind: output, shape index: {}]  }
   0x1   :  { %12 = vsyncpa [#allocation7], 0 }
   0x2   :  { %13 = vsyncpa [#allocation10], 0 }
   0x3   :  { %14 = vsyncpa [#allocation13], 0 }
   0x4   :  { %15 = vsyncpa [#allocation5], 0 }
   0x5   :  { %17 = vsyncpa [#allocation5 + $0x1], 0  ;;  %s1888_s21 = smov 0   ;;  %s1890_s22 = smov 0  }
   0x6   :  { %s1892_s23 = smov 0  }
   0x7 LB: > { %s1173_s24 = sadd.s32 4294967295, %s1840_s23   ;;  %p1175_p0 = scmp.ge.s32.totalorder %s1840_s23, 1  ;;  %s1840_s23 = sphi %s1892_s23, %s23_s23   ;;  %s1836_s22 = sphi %s1890_s22, %s2217_s22   ;;  %s1832_s21 = sphi %s1888_s21, %s2216_s21  }
   0x8   : > { %p199_p1 = scmp.lt.s32.totalorder %s1840_s23, 3  ;;  %p1909_p2 = scmp.eq.s32.totalorder %s1173_s24, 0 }
   0x9   : > { %s1842_s28 = smov [#allocation6]   ;;  %s1843_s30 = smov [#allocation9]  }
   0xa   : > { %s2208_s26 = scalar_select %p1909_p2, 1, 0 }
   0xb   : > { %p1913_p3 = pnand %p1175_p0, %p199_p1  ;;  %s227_s29 = sshll.u32 %s1842_s28, 4  ;;  %s228_s29 = int_to_ptr.vmem [resolvable:$true] %s227_s29 }
   0xc   : > { %s254_s7 = sshll.u32 %s1843_s30, 4  ;;  %s1604_s11 = scalar_lea.hbm %s2199_s1, 1024  ;;  %s1925_s7 = int_to_ptr.vmem [resolvable:$true] %s254_s7 }
   0xd   : > { %s2209_s27 = scalar_select %p1913_p3, 1, 0 }
   0xe   : > { %p1499_p4 = pneg %p1913_p3  ;;  %p1605_p6 = scmp.ne.s32.totalorder %s2199_s1, %s1604_s11 }
   0xf   : > { %p1611_p10 = scmp.lt.u32.totalorder %s1604_s11, %s2199_s1 }
  0x10   : > { %p1921_p5 = pnand %p1909_p2, %p1499_p4 }
  0x12   : > { %p1935_p7 = pneg %p1921_p5 }
  0x14   : > { %p1607_p8 = pnand %p1935_p7, %p1605_p6 }
  0x16   : > { %p1608_p9 = pneg %p1607_p8 }
  0x18   : > { %p1613_p11 = pnand %p1611_p10, %p1608_p9 }
  0x1a   : > { %1616 = shalt.err (!%p1613_p11)
}
  0x1b   : > { %s1617_s17 = scalar_lea.vmem %s228_s29, 1024  ;;  %p1625_p1 = scmp.lt.s32.totalorder %s228_s29, %s228_s29 }
  0x1c   : > { %p1618_p12 = scmp.ne.s32.totalorder %s228_s29, %s1617_s17  ;;  %p1626_p4 = scmp.lt.s32.totalorder %s1617_s17, %s1617_s17 }
  0x1e   : > { %p1620_p13 = pnand %p1618_p12, %p1935_p7  ;;  %p1627_p2 = por %p1626_p4, %p1625_p1 }
  0x20   : > { %p1621_p0 = pneg %p1620_p13 }
  0x22   : > { %p1628_p3 = pnand %p1627_p2, %p1621_p0 }
  0x24   : > { %1631 = shalt.err (!%p1628_p3)
}
  0x25   : > { %s1844_s18 = smov 128   ;;  %s1845_s19 = smov 8  }
  0x26   : > { %1505 = dma.hbm_to_vmem [thread:$0]  (!%p1921_p5), %s2199_s1, 1024, %s228_s29, [#allocation7], %s1844_s18, %s1844_s18, %s1845_s19  }
  0x27   : > { %s1632_s10 = scalar_lea.hbm %s2201_s3, 16 }
  0x28   : > { %p1633_p2 = scmp.ne.s32.totalorder %s2201_s3, %s1632_s10  ;;  %p1639_p8 = scmp.lt.u32.totalorder %s1632_s10, %s2201_s3 }
  0x2a   : > { %p1635_p3 = pnand %p1633_p2, %p1935_p7 }
  0x2c   : > { %p1636_p6 = pneg %p1635_p3 }
  0x2e   : > { %p1641_p9 = pnand %p1639_p8, %p1636_p6 }
  0x30   : > { %1644 = shalt.err (!%p1641_p9)
}
  0x31   : > { %s1645_s29 = scalar_lea.vmem %s1925_s7, 16  ;;  %s1652_s16 = scalar_lea.vmem %s1925_s7, 32 }
  0x32   : > { %p1646_p10 = scmp.ne.s32.totalorder %s1925_s7, %s1645_s29  ;;  %p1653_p13 = scmp.lt.s32.totalorder %s1925_s7, %s1925_s7 }
  0x33   : > { %p1654_p0 = scmp.lt.s32.totalorder %s1652_s16, %s1645_s29 }
  0x34   : > { %p1648_p11 = pnand %p1646_p10, %p1935_p7 }
  0x35   : > { %p1655_p1 = por %p1654_p0, %p1653_p13 }
  0x36   : > { %p1649_p12 = pneg %p1648_p11 }
  0x38   : > { %p1656_p4 = pnand %p1655_p1, %p1649_p12 }
  0x3a   : > { %1659 = shalt.err (!%p1656_p4)
}
  0x3b   : > { %1511 = dma.hbm_to_vmem [thread:$0]  (!%p1921_p5), %s2201_s3, 16, %s1925_s7, [#allocation10]  }
  0x3c   : > { %s35_s28 = sadd.s32 1, %s1836_s22  ;;  %s1846_s30 = smov [#allocation3]  }
  0x3d   : > { %p37_p2 = scmp.ge.s32.totalorder %s35_s28, 2  ;;  %s214_s9 = sshll.u32 %s1846_s30, 4  ;;  %s215_s9 = int_to_ptr.vmem [resolvable:$true] %s214_s9 }
  0x3e   : > { %s1660_s12 = scalar_lea.hbm %s2198_s0, 1024 }
  0x3f   : > { %s2219_s28 = smov (%p37_p2, %s35_s28), 0  ;;  %p1661_p3 = scmp.ne.s32.totalorder %s2198_s0, %s1660_s12 }
  0x40   : > { %p1667_p9 = scmp.lt.u32.totalorder %s1660_s12, %s2198_s0 }
  0x41   : > { %p1663_p6 = pnand %p1661_p3, %p1935_p7 }
  0x43   : > { %p1664_p8 = pneg %p1663_p6 }
  0x45   : > { %p1669_p10 = pnand %p1667_p9, %p1664_p8 }
  0x47   : > { %1672 = shalt.err (!%p1669_p10)
}
  0x48   : > { %s1673_s16 = scalar_lea.vmem %s215_s9, 1024  ;;  %p1681_p0 = scmp.lt.s32.totalorder %s215_s9, %s215_s9 }
  0x49   : > { %p1674_p11 = scmp.ne.s32.totalorder %s215_s9, %s1673_s16  ;;  %p1682_p1 = scmp.lt.s32.totalorder %s1673_s16, %s1673_s16 }
  0x4b   : > { %p1676_p12 = pnand %p1674_p11, %p1935_p7  ;;  %p1683_p4 = por %p1682_p1, %p1681_p0 }
  0x4d   : > { %p1677_p13 = pneg %p1676_p12 }
  0x4f   : > { %p1684_p2 = pnand %p1683_p4, %p1677_p13 }
  0x51   : > { %1687 = shalt.err (!%p1684_p2)
}
  0x52   : > { %1502 = dma.hbm_to_vmem [thread:$0]  (!%p1921_p5), %s2198_s0, 1024, %s215_s9, [#allocation4], %s1844_s18, %s1844_s18, %s1845_s19  }
  0x53   : > { %s1847_s30 = smov [#allocation8]   ;;  %s1848_s11 = smov [#allocation11]  }
  0x54   : > { %s240_s10 = sshll.u32 %s1847_s30, 4  ;;  %s264_s12 = sshll.u32 %s1848_s11, 4  ;;  %s241_s10 = int_to_ptr.vmem [resolvable:$true] %s240_s10  ;;  %s265_s12 = int_to_ptr.vmem [resolvable:$true] %s264_s12 }
  0x55   : > { %s1688_s29 = scalar_lea.hbm %s2200_s2, 256 }
  0x56   : > { %p1689_p3 = scmp.ne.s32.totalorder %s2200_s2, %s1688_s29  ;;  %p1695_p9 = scmp.lt.u32.totalorder %s1688_s29, %s2200_s2 }
  0x58   : > { %p1691_p6 = pnand %p1689_p3, %p1935_p7 }
  0x5a   : > { %p1692_p8 = pneg %p1691_p6 }
  0x5c   : > { %p1697_p10 = pnand %p1695_p9, %p1692_p8 }
  0x5e   : > { %1700 = shalt.err (!%p1697_p10)
}
  0x5f   : > { %s1701_s9 = scalar_lea.vmem %s241_s10, 256  ;;  %p1709_p0 = scmp.lt.s32.totalorder %s241_s10, %s241_s10 }
  0x60   : > { %p1702_p11 = scmp.ne.s32.totalorder %s241_s10, %s1701_s9  ;;  %p1710_p1 = scmp.lt.s32.totalorder %s1701_s9, %s1701_s9 }
  0x62   : > { %p1704_p12 = pnand %p1702_p11, %p1935_p7  ;;  %p1711_p4 = por %p1710_p1, %p1709_p0 }
  0x64   : > { %p1705_p13 = pneg %p1704_p12 }
  0x66   : > { %p1712_p2 = pnand %p1711_p4, %p1705_p13 }
  0x68   : > { %1715 = shalt.err (!%p1712_p2)
}
  0x69   : > { %1508 = dma.hbm_to_vmem [thread:$0]  (!%p1921_p5), %s2200_s2, 256, %s241_s10, [#allocation7], %s1844_s18, %s1844_s18, %s1845_s19  }
  0x6a   : > { %s1716_s13 = scalar_lea.hbm %s2202_s4, 2048 }
  0x6b   : > { %p1717_p3 = scmp.ne.s32.totalorder %s2202_s4, %s1716_s13  ;;  %p1723_p9 = scmp.lt.u32.totalorder %s1716_s13, %s2202_s4 }
  0x6d   : > { %p1719_p6 = pnand %p1717_p3, %p1935_p7 }
  0x6f   : > { %p1720_p8 = pneg %p1719_p6 }
  0x71   : > { %p1725_p10 = pnand %p1723_p9, %p1720_p8 }
  0x73   : > { %1728 = shalt.err (!%p1725_p10)
}
  0x74   : > { %s1729_s17 = scalar_lea.vmem %s265_s12, 2048  ;;  %p1737_p0 = scmp.lt.s32.totalorder %s265_s12, %s265_s12 }
  0x75   : > { %p1730_p11 = scmp.ne.s32.totalorder %s265_s12, %s1729_s17  ;;  %p1738_p1 = scmp.lt.s32.totalorder %s1729_s17, %s1729_s17 }
  0x77   : > { %p1732_p12 = pnand %p1730_p11, %p1935_p7  ;;  %p1739_p4 = por %p1738_p1, %p1737_p0 }
  0x79   : > { %p1733_p13 = pneg %p1732_p12 }
  0x7b   : > { %p1740_p2 = pnand %p1739_p4, %p1733_p13 }
  0x7d   : > { %1743 = shalt.err (!%p1740_p2)
}
  0x7e   : > { %1514 = dma.hbm_to_vmem [thread:$0]  (!%p1921_p5), %s2202_s4, 2048, %s265_s12, [#allocation10], %s1844_s18, %s1844_s18, %s1845_s19  }
  0x7f   : > { %s1849_s25 = smov [#allocation12]   ;;  %s1744_s13 = scalar_lea.hbm %s2203_s5, 16 }
  0x80   : > { %s278_s20 = sshll.u32 %s1849_s25, 4  ;;  %p1745_p3 = scmp.ne.s32.totalorder %s2203_s5, %s1744_s13  ;;  %s279_s20 = int_to_ptr.vmem [resolvable:$true] %s278_s20 }
  0x81   : > { %p1751_p9 = scmp.lt.u32.totalorder %s1744_s13, %s2203_s5 }
  0x82   : > { %p1747_p6 = pnand %p1745_p3, %p1935_p7 }
  0x84   : > { %p1748_p8 = pneg %p1747_p6 }
  0x86   : > { %p1753_p10 = pnand %p1751_p9, %p1748_p8 }
  0x88   : > { %1756 = shalt.err (!%p1753_p10)
}
  0x89   : > { %s1757_s18 = scalar_lea.vmem %s279_s20, 16  ;;  %s1764_s19 = scalar_lea.vmem %s279_s20, 32 }
  0x8a   : > { %p1758_p11 = scmp.ne.s32.totalorder %s279_s20, %s1757_s18  ;;  %p1765_p0 = scmp.lt.s32.totalorder %s279_s20, %s279_s20 }
  0x8b   : > { %p1766_p1 = scmp.lt.s32.totalorder %s1764_s19, %s1757_s18 }
  0x8c   : > { %p1760_p12 = pnand %p1758_p11, %p1935_p7 }
  0x8d   : > { %p1767_p4 = por %p1766_p1, %p1765_p0 }
  0x8e   : > { %p1761_p13 = pneg %p1760_p12 }
  0x90   : > { %p1768_p2 = pnand %p1767_p4, %p1761_p13 }
  0x92   : > { %1771 = shalt.err (!%p1768_p2)
}
  0x93   : > { %1517 = dma.hbm_to_vmem [thread:$0]  (!%p1921_p5), %s2203_s5, 16, %s279_s20, [#allocation13]  }
  0x94   : > { %p2212_p3 = scmp.ne.s32.totalorder %s2209_s27, 0 }
  0x95   : > { %p2213_p6 = scmp.ne.s32.totalorder (!%p2212_p3), %s2208_s26, 0 }
  0x96   : > { %291 = sbr.rel (%p2212_p3) target bundleno = 1291 (0x50b), region = 44 }
  0x9d   : > { %1811 = dma.done.wait (%p2213_p6), [#allocation4], 1024  }
  0x9e   : > { %1813 = vsyncadd (%p2213_p6), [#allocation4], 4294966272 }
  0x9f   : > { %1815 = dma.done.wait (%p2213_p6), [#allocation7], 1280  }
  0xa0   : > { %1817 = vsyncadd (%p2213_p6), [#allocation7], 4294966016 }
  0xa1   : > { %1819 = dma.done.wait (%p2213_p6), [#allocation10], 2064  }
  0xa2   : > { %1821 = vsyncadd (%p2213_p6), [#allocation10], 4294965232 }
  0xa3   : > { %1823 = dma.done.wait (%p2213_p6), [#allocation13], 16  }
  0xa4   : > { %1825 = vsyncadd (%p2213_p6), [#allocation13], 4294967280  ;;  %p1189_p5 = scmp.ne.s32.totalorder %s1832_s21, 0 }
  0xa5   : > { %v351_v0 = vld [vmem:[#allocation6] sm:$0xff] (!%p1189_p5)  ;;  %v352_v1 = vld [vmem:[#allocation6 + $0x8] sm:$0xff] (!%p1189_p5)  ;;  %v353_v2 = vld [vmem:[#allocation6 + $0x10] sm:$0xff] (!%p1189_p5)  ;;  %vm359_vm0 = vcmask (!%p1189_p5), 523264   ;;  %vm498_vm1 = vcmask (!%p1189_p5), 130048  }
  0xa6   : > { %342 = sbr.rel (%p1189_p5) target bundleno = 628 (0x274), region = 72  ;;  %v1403_v3 = vpack.c.bf16 (!%p1189_p5), %v352_v1, %v351_v0  ;;  %v354_v4 = vld [vmem:[#allocation6 + $0x18] sm:$0xff] (!%p1189_p5)  ;;  %v355_v6 = vld [vmem:[#allocation6 + $0x20] sm:$0xff] (!%p1189_p5)  ;;  %v356_v7 = vld [vmem:[#allocation6 + $0x28] sm:$0xff] (!%p1189_p5) }
  0xa7   : > { %v1407_v5 = vpack.c.bf16 (!%p1189_p5), %v354_v4, %v353_v2  ;;  %v343_v8 = vld [vmem:[#allocation3] sm:$0xff] (!%p1189_p5)  ;;  %v1411_v9 = vpack.c.bf16 (!%p1189_p5), %v356_v7, %v355_v6  ;;  %v490_v11 = vld [vmem:[#allocation8 + $0x8] sm:$0xff] (!%p1189_p5)  ;;  %v357_v12 = vld [vmem:[#allocation6 + $0x30] sm:$0xff] (!%p1189_p5) }
  0xa8   : > { %1404 = vmatprep.subr.bf16.mxu0 (!%p1189_p5), %v1403_v3  ;;  %1303 = vmatprep.mubr.msk.f32.mxu0 (!%p1189_p5), %vm359_vm0, %v343_v8  ;;  %v489_v10 = vld [vmem:[#allocation8] sm:$0xff] (!%p1189_p5)  ;;  %v358_v13 = vld [vmem:[#allocation6 + $0x38] sm:$0xff] (!%p1189_p5)  ;;  %v344_v16 = vld [vmem:[#allocation3 + $0x8] sm:$0xff] (!%p1189_p5) }
  0xa9   : > { %1406 = vmatpush3.bf16.msra.mxu0 (!%p1189_p5), %v1403_v3  ;;  %v1419_v14 = vpack.c.bf16 (!%p1189_p5), %v490_v11, %v489_v10  ;;  %v1415_v15 = vpack.c.bf16 (!%p1189_p5), %v358_v13, %v357_v12  ;;  %v345_v17 = vld [vmem:[#allocation3 + $0x10] sm:$0xff] (!%p1189_p5)  ;;  %v346_v18 = vld [vmem:[#allocation3 + $0x18] sm:$0xff] (!%p1189_p5)  ;;  %v347_v19 = vld [vmem:[#allocation3 + $0x20] sm:$0xff] (!%p1189_p5) }
  0xaa   : > { %1408 = vmatprep.subr.bf16.mxu0 (!%p1189_p5), %v1407_v5  ;;  %v348_v20 = vld [vmem:[#allocation3 + $0x28] sm:$0xff] (!%p1189_p5)  ;;  %v349_v21 = vld [vmem:[#allocation3 + $0x30] sm:$0xff] (!%p1189_p5)  ;;  %v350_v22 = vld [vmem:[#allocation3 + $0x38] sm:$0xff] (!%p1189_p5) }
  0xab   : > { %1420 = vmatprep.subr.bf16.mxu1 (!%p1189_p5), %v1419_v14  ;;  %v1198_v31 = vld [vmem:[#allocation9] ss:$0 sm:$0xff] (!%p1189_p5) }
  0xac   : > { %1422 = vmatpush3.bf16.msra.mxu1 (!%p1189_p5), %v1419_v14 }
  0xad   : > { %1410 = vmatpush3.bf16.msra.mxu0 %v1407_v5 }
  0xae   : > { %1412 = vmatprep.subr.bf16.mxu0 %v1411_v9 }
  0xb1   : > { %1414 = vmatpush3.bf16.msra.mxu0 %v1411_v9 }
  0xb2   : > { %1416 = vmatprep.subr.bf16.mxu0 %v1415_v15 }
  0xb5   : > { %1418 = vmatpush3.bf16.msra.mxu0 %v1415_v15 }
  0xb8   : > { %1304 = vmatmul.mubr.msk.f32.vlgmr.msra.gmra.mrb[0].mxu0 %vm359_vm0, %v344_v16 }
  0xb9   : > { %1306 = vmatprep.mubr.msk.f32.mxu0 %vm359_vm0, %v345_v17 }
  0xbc   : > { %1307 = vmatmul.mubr.msk.f32.gmra.mrb[2].mxu0 %vm359_vm0, %v346_v18 }
  0xbd   : > { %1309 = vmatprep.mubr.msk.f32.mxu0 %vm359_vm0, %v347_v19 }
  0xc0   : > { %1310 = vmatmul.mubr.msk.f32.gmra.mrb[4].mxu0 %vm359_vm0, %v348_v20 }
  0xc1   : > { %1312 = vmatprep.mubr.msk.f32.mxu0 %vm359_vm0, %v349_v21 }
  0xc4   : > { %1313 = vmatmul.mubr.msk.f32.gmra.mrb[6].mxu0 %vm359_vm0, %v350_v22 }
 0x18b   : > { %v1305_v23 = vpop.f32.mrb[0].mxu0 }
 0x18c   : > { %v450_v24 = vpop.f32.mrb[1].mxu0 }
 0x18d   : > { %1319 = vmatprep.mubr.msk.f32.mxu1 %vm498_vm1, %v450_v24 }
 0x18e   : > { %1320 = vmatmul.mubr.msk.f32.vlgmr.msra.gmra.mrb[0].mxu1 %vm498_vm1, %v1305_v23 }
 0x18f   : > { %v1308_v25 = vpop.f32.mrb[2].mxu0 }
 0x190   : > { %v460_v26 = vpop.f32.mrb[3].mxu0 }
 0x191   : > { %1322 = vmatprep.mubr.msk.f32.mxu1 %vm498_vm1, %v460_v26 }
 0x192   : > { %1323 = vmatmul.mubr.msk.f32.gmra.mrb[2].mxu1 %vm498_vm1, %v1308_v25 }
 0x193   : > { %v1311_v27 = vpop.f32.mrb[4].mxu0 }
 0x194   : > { %v470_v28 = vpop.f32.mrb[5].mxu0 }
 0x195   : > { %1325 = vmatprep.mubr.msk.f32.mxu1 %vm498_vm1, %v470_v28 }
 0x196   : > { %1326 = vmatmul.mubr.msk.f32.gmra.mrb[4].mxu1 %vm498_vm1, %v1311_v27 }
 0x197   : > { %v1314_v29 = vpop.f32.mrb[6].mxu0 }
 0x198   : > { %v480_v30 = vpop.f32.mrb[7].mxu0 }
 0x199   : > { %1328 = vmatprep.mubr.msk.f32.mxu1 %vm498_vm1, %v480_v30 }
 0x19a   : > { %1329 = vmatmul.mubr.msk.f32.gmra.mrb[6].mxu1 %vm498_vm1, %v1314_v29 }
 0x261   : > { %v1321_v32 = vpop.f32.mrb[0].mxu1 }
 0x262   : > { %v595_v33 = vadd.f32 %v1321_v32, %v1198_v31  ;;  %v589_v34 = vpop.f32.mrb[1].mxu1 }
 0x263   : > { %v590_v35 = vadd.f32 %v1198_v31, %v589_v34 }
 0x264   : > { %v630_v36 = vmax.f32 %v595_v33, 0.0 }
 0x265   : > { %v629_v37 = vmax.f32 %v590_v35, 0.0  ;;  %v1324_v38 = vpop.f32.mrb[2].mxu1 }
 0x266   : > { %639 = vst [vmem:[#allocation2 + $0x8] sm:$0xff] %v630_v36  ;;  %v605_v39 = vadd.f32 %v1324_v38, %v1198_v31  ;;  %v599_v40 = vpop.f32.mrb[3].mxu1 }
 0x267   : > { %638 = vst [vmem:[#allocation2] sm:$0xff] %v629_v37  ;;  %v600_v41 = vadd.f32 %v1198_v31, %v599_v40 }
 0x268   : > { %v632_v42 = vmax.f32 %v605_v39, 0.0 }
 0x269   : > { %v631_v43 = vmax.f32 %v600_v41, 0.0  ;;  %v1327_v44 = vpop.f32.mrb[4].mxu1 }
 0x26a   : > { %641 = vst [vmem:[#allocation2 + $0x18] sm:$0xff] %v632_v42  ;;  %v615_v45 = vadd.f32 %v1327_v44, %v1198_v31  ;;  %v609_v46 = vpop.f32.mrb[5].mxu1 }
 0x26b   : > { %640 = vst [vmem:[#allocation2 + $0x10] sm:$0xff] %v631_v43  ;;  %v610_v47 = vadd.f32 %v1198_v31, %v609_v46 }
 0x26c   : > { %v634_v48 = vmax.f32 %v615_v45, 0.0 }
 0x26d   : > { %v633_v49 = vmax.f32 %v610_v47, 0.0  ;;  %v1330_v50 = vpop.f32.mrb[6].mxu1 }
 0x26e   : > { %643 = vst [vmem:[#allocation2 + $0x28] sm:$0xff] %v634_v48  ;;  %v625_v51 = vadd.f32 %v1330_v50, %v1198_v31  ;;  %v619_v52 = vpop.f32.mrb[7].mxu1 }
 0x26f   : > { %642 = vst [vmem:[#allocation2 + $0x20] sm:$0xff] %v633_v49  ;;  %v620_v53 = vadd.f32 %v1198_v31, %v619_v52 }
 0x270   : > { %v636_v54 = vmax.f32 %v625_v51, 0.0 }
 0x271   : > { %v635_v55 = vmax.f32 %v620_v53, 0.0 }
 0x272   : > { %645 = vst [vmem:[#allocation2 + $0x38] sm:$0xff] %v636_v54 }
 0x273   : > { %644 = vst [vmem:[#allocation2 + $0x30] sm:$0xff] %v635_v55 }
 0x274 PF: > { %p1207_p7 = scmp.ne.s32.totalorder %s1832_s21, 1 }
 0x275   : > { %v658_v56 = vld [vmem:[#allocation2] sm:$0xff] (!%p1207_p7)  ;;  %v659_v57 = vld [vmem:[#allocation2 + $0x8] sm:$0xff] (!%p1207_p7)  ;;  %v660_v58 = vld [vmem:[#allocation2 + $0x10] sm:$0xff] (!%p1207_p7)  ;;  %vm666_vm2 = vcmask (!%p1207_p7), 523264  }
 0x276   : > { %649 = sbr.rel (%p1207_p7) target bundleno = 1267 (0x4f3), region = 76  ;;  %v1423_v59 = vpack.c.bf16 (!%p1207_p7), %v659_v57, %v658_v56  ;;  %v661_v60 = vld [vmem:[#allocation2 + $0x18] sm:$0xff] (!%p1207_p7)  ;;  %v662_v62 = vld [vmem:[#allocation2 + $0x20] sm:$0xff] (!%p1207_p7)  ;;  %v663_v63 = vld [vmem:[#allocation2 + $0x28] sm:$0xff] (!%p1207_p7) }
 0x277   : > { %v1427_v61 = vpack.c.bf16 (!%p1207_p7), %v661_v60, %v660_v58  ;;  %v650_v0 = vld [vmem:[#allocation3] sm:$0xff] (!%p1207_p7)  ;;  %v1431_v1 = vpack.c.bf16 (!%p1207_p7), %v663_v63, %v662_v62  ;;  %v796_v3 = vld [vmem:[#allocation11] sm:$0xff] (!%p1207_p7)  ;;  %v799_v8 = vld [vmem:[#allocation11 + $0x18] sm:$0xff] (!%p1207_p7) }
 0x278   : > { %1424 = vmatprep.subr.bf16.mxu0 (!%p1207_p7), %v1423_v59  ;;  %1347 = vmatprep.mubr.msk.f32.mxu0 (!%p1207_p7), %vm666_vm2, %v650_v0  ;;  %v797_v4 = vld [vmem:[#allocation11 + $0x8] sm:$0xff] (!%p1207_p7)  ;;  %v798_v7 = vld [vmem:[#allocation11 + $0x10] sm:$0xff] (!%p1207_p7)  ;;  %v800_v10 = vld [vmem:[#allocation11 + $0x20] sm:$0xff] (!%p1207_p7) }
 0x279   : > { %1426 = vmatpush3.bf16.msra.mxu0 (!%p1207_p7), %v1423_v59  ;;  %v665_v5 = vld [vmem:[#allocation2 + $0x38] sm:$0xff] (!%p1207_p7)  ;;  %v1439_v6 = vpack.c.bf16 (!%p1207_p7), %v797_v4, %v796_v3  ;;  %v1443_v9 = vpack.c.bf16 (!%p1207_p7), %v799_v8, %v798_v7  ;;  %v802_v14 = vld [vmem:[#allocation11 + $0x30] sm:$0xff] (!%p1207_p7)  ;;  %v803_v15 = vld [vmem:[#allocation11 + $0x38] sm:$0xff] (!%p1207_p7) }
 0x27a   : > { %1428 = vmatprep.subr.bf16.mxu0 (!%p1207_p7), %v1427_v61  ;;  %v664_v2 = vld [vmem:[#allocation2 + $0x30] sm:$0xff] (!%p1207_p7)  ;;  %v801_v11 = vld [vmem:[#allocation11 + $0x28] sm:$0xff] (!%p1207_p7)  ;;  %v1451_v16 = vpack.c.bf16 (!%p1207_p7), %v803_v15, %v802_v14  ;;  %v651_v19 = vld [vmem:[#allocation3 + $0x8] sm:$0xff] (!%p1207_p7) }
 0x27b   : > { %1440 = vmatprep.subr.bf16.mxu1 (!%p1207_p7), %v1439_v6  ;;  %v1435_v12 = vpack.c.bf16 (!%p1207_p7), %v665_v5, %v664_v2  ;;  %v1447_v13 = vpack.c.bf16 (!%p1207_p7), %v801_v11, %v800_v10  ;;  %v804_v17 = vld [vmem:[#allocation11 + $0x40] sm:$0xff] (!%p1207_p7)  ;;  %v805_v18 = vld [vmem:[#allocation11 + $0x48] sm:$0xff] (!%p1207_p7)  ;;  %v806_v22 = vld [vmem:[#allocation11 + $0x50] sm:$0xff] (!%p1207_p7) }
 0x27c   : > { %1442 = vmatpush3.bf16.msra.mxu1 (!%p1207_p7), %v1439_v6  ;;  %v652_v20 = vld [vmem:[#allocation3 + $0x10] sm:$0xff] (!%p1207_p7)  ;;  %v1455_v21 = vpack.c.bf16 (!%p1207_p7), %v805_v18, %v804_v17  ;;  %v653_v24 = vld [vmem:[#allocation3 + $0x18] sm:$0xff] (!%p1207_p7)  ;;  %v654_v25 = vld [vmem:[#allocation3 + $0x20] sm:$0xff] (!%p1207_p7) }
 0x27d   : > { %1430 = vmatpush3.bf16.msra.mxu0 %v1427_v61  ;;  %1444 = vmatprep.subr.bf16.mxu1 %v1443_v9  ;;  %v807_v23 = vld [vmem:[#allocation11 + $0x58] sm:$0xff]  ;;  %v808_v27 = vld [vmem:[#allocation11 + $0x60] sm:$0xff]  ;;  %v809_v28 = vld [vmem:[#allocation11 + $0x68] sm:$0xff] }
 0x27e   : > { %1432 = vmatprep.subr.bf16.mxu0 %v1431_v1  ;;  %v1459_v26 = vpack.c.bf16 %v807_v23, %v806_v22  ;;  %v655_v29 = vld [vmem:[#allocation3 + $0x28] sm:$0xff]  ;;  %v656_v30 = vld [vmem:[#allocation3 + $0x30] sm:$0xff]  ;;  %v1463_v31 = vpack.c.bf16 %v809_v28, %v808_v27  ;;  %v657_v34 = vld [vmem:[#allocation3 + $0x38] sm:$0xff] }
 0x27f   : > { %v810_v32 = vld [vmem:[#allocation11 + $0x70] sm:$0xff]  ;;  %v811_v33 = vld [vmem:[#allocation11 + $0x78] sm:$0xff]  ;;  %v1216_v44 = vld [vmem:[#allocation12] ss:$0 sm:$0xff] }
 0x280   : > { %1446 = vmatpush3.bf16.msra.mxu1 %v1443_v9  ;;  %v1467_v35 = vpack.c.bf16 %v811_v33, %v810_v32 }
 0x281   : > { %1434 = vmatpush3.bf16.msra.mxu0 %v1431_v1  ;;  %1448 = vmatprep.subr.bf16.mxu1 %v1447_v13 }
 0x282   : > { %1436 = vmatprep.subr.bf16.mxu0 %v1435_v12 }
 0x284   : > { %1450 = vmatpush3.bf16.msra.mxu1 %v1447_v13 }
 0x285   : > { %1438 = vmatpush3.bf16.msra.mxu0 %v1435_v12  ;;  %1452 = vmatprep.subr.bf16.mxu1 %v1451_v16 }
 0x288   : > { %1348 = vmatmul.mubr.msk.f32.vlgmr.msra.gmra.mrb[0].mxu0 %vm666_vm2, %v651_v19  ;;  %1454 = vmatpush3.bf16.msra.mxu1 %v1451_v16 }
 0x289   : > { %1350 = vmatprep.mubr.msk.f32.mxu0 %vm666_vm2, %v652_v20  ;;  %1456 = vmatprep.subr.bf16.mxu1 %v1455_v21 }
 0x28c   : > { %1351 = vmatmul.mubr.msk.f32.gmra.mrb[2].mxu0 %vm666_vm2, %v653_v24  ;;  %1458 = vmatpush3.bf16.msra.mxu1 %v1455_v21 }
 0x28d   : > { %1353 = vmatprep.mubr.msk.f32.mxu0 %vm666_vm2, %v654_v25  ;;  %1460 = vmatprep.subr.bf16.mxu1 %v1459_v26 }
 0x290   : > { %1354 = vmatmul.mubr.msk.f32.gmra.mrb[4].mxu0 %vm666_vm2, %v655_v29  ;;  %1462 = vmatpush3.bf16.msra.mxu1 %v1459_v26 }
 0x291   : > { %1356 = vmatprep.mubr.msk.f32.mxu0 %vm666_vm2, %v656_v30  ;;  %1464 = vmatprep.subr.bf16.mxu1 %v1463_v31 }
 0x294   : > { %1357 = vmatmul.mubr.msk.f32.gmra.mrb[6].mxu0 %vm666_vm2, %v657_v34  ;;  %1466 = vmatpush3.bf16.msra.mxu1 %v1463_v31 }
 0x295   : > { %1468 = vmatprep.subr.bf16.mxu1 %v1467_v35 }
 0x298   : > { %1470 = vmatpush3.bf16.msra.mxu1 %v1467_v35 }
 0x35b   : > { %v1349_v36 = vpop.f32.mrb[0].mxu0 }
 0x35c   : > { %v757_v37 = vpop.f32.mrb[1].mxu0 }
 0x35d   : > { %1391 = vmatprep.mubr.f32.mxu1 %v757_v37 }
 0x35e   : > { %1392 = vmatmul.mubr.f32.vlgmr.msra.gmra.mrb[0].mxu1 %v1349_v36 }
 0x35f   : > { %v1352_v38 = vpop.f32.mrb[2].mxu0 }
 0x360   : > { %v767_v39 = vpop.f32.mrb[3].mxu0 }
 0x361   : > { %1394 = vmatprep.mubr.f32.mxu1 %v767_v39 }
 0x362   : > { %1395 = vmatmul.mubr.f32.gmra.mrb[2].mxu1 %v1352_v38 }
 0x363   : > { %v1355_v40 = vpop.f32.mrb[4].mxu0 }
 0x364   : > { %v777_v41 = vpop.f32.mrb[5].mxu0 }
 0x365   : > { %1397 = vmatprep.mubr.f32.mxu1 %v777_v41 }
 0x366   : > { %1398 = vmatmul.mubr.f32.gmra.mrb[4].mxu1 %v1355_v40 }
 0x367   : > { %v1358_v42 = vpop.f32.mrb[6].mxu0 }
 0x368   : > { %v787_v43 = vpop.f32.mrb[7].mxu0 }
 0x369   : > { %1400 = vmatprep.mubr.f32.mxu1 %v787_v43 }
 0x36a   : > { %1401 = vmatmul.mubr.f32.gmra.mrb[6].mxu1 %v1358_v42 }
 0x431   : > { %v1393_v45 = vpop.f32.mrb[0].mxu1 }
 0x432   : > { %v2106_v46 = vadd.f32 %v1393_v45, %v1216_v44  ;;  %v885_v47 = vpop.f32.mrb[1].mxu1 }
 0x433   : > { %v2108_v48 = vadd.f32 %v1216_v44, %v885_v47 }
 0x434   : > { %v925_v49 = vmul.f32 %v2106_v46, %v2106_v46 }
 0x435   : > { %v1396_v50 = vpop.f32.mrb[2].mxu1  ;;  %v924_v54 = vmul.f32 %v2108_v48, %v2108_v48 }
 0x436   : > { %v2112_v51 = vadd.f32 %v1396_v50, %v1216_v44  ;;  %934 = vadd.xlane.f32.xlu0 %v925_v49  ;;  %v895_v52 = vpop.f32.mrb[3].mxu1 }
 0x437   : > { %v2114_v53 = vadd.f32 %v1216_v44, %v895_v52 }
 0x438   : > { %v927_v55 = vmul.f32 %v2112_v51, %v2112_v51 }
 0x439   : > { %v1399_v56 = vpop.f32.mrb[4].mxu1  ;;  %v926_v60 = vmul.f32 %v2114_v53, %v2114_v53 }
 0x43a   : > { %932 = vadd.xlane.f32.xlu0 %v924_v54  ;;  %938 = vadd.xlane.f32.xlu1 %v927_v55  ;;  %v905_v57 = vpop.f32.mrb[5].mxu1  ;;  %v2122_v59 = vadd.f32 %v1399_v56, %v1216_v44 }
 0x43b   : > { %v2120_v58 = vadd.f32 %v1216_v44, %v905_v57 }
 0x43c   : > { %v929_v2 = vmul.f32 %v2122_v59, %v2122_v59 }
 0x43d   : > { %v1402_v61 = vpop.f32.mrb[6].mxu1  ;;  %v928_v62 = vmul.f32 %v2120_v58, %v2120_v58 }
 0x43e   : > { %936 = vadd.xlane.f32.xlu1 %v926_v60  ;;  %v915_v63 = vpop.f32.mrb[7].mxu1  ;;  %v2130_v1 = vadd.f32 %v1402_v61, %v1216_v44 }
 0x43f   : > { %v2128_v0 = vadd.f32 %v1216_v44, %v915_v63  ;;  %940 = vadd.xlane.f32.xlu0 %v928_v62 }
 0x440   : > { %v931_v4 = vmul.f32 %v2130_v1, %v2130_v1 }
 0x441   : > { %v930_v3 = vmul.f32 %v2128_v0, %v2128_v0 }
 0x442   : > { %942 = vadd.xlane.f32.xlu1 %v929_v2 }
 0x443   : > { %944 = vadd.xlane.f32.xlu0 %v930_v3 }
 0x446   : > { %946 = vadd.xlane.f32.xlu1 %v931_v4 }
 0x4c3   : > { %v935_v5 = vpop.xlane.xlu0 %934 }
 0x4c4   : > { %1572 = vrsqrt.f32 %v935_v5  ;;  %vm957_vm3 = vcmp.eq.f32.partialorder %v935_v5, inf  ;;  %v960_v13 = vand.u32 2147483648, %v935_v5  ;;  %vm959_vm4 = vcmp.eq.f32.partialorder %v935_v5, 0.0 }
 0x4c7   : > { %v933_v6 = vpop.xlane.xlu0 %932  ;;  %v939_v7 = vpop.xlane.xlu1 %938 }
 0x4c8   : > { %1574 = vrsqrt.f32 %v933_v6  ;;  %vm950_vm5 = vcmp.eq.f32.partialorder %v933_v6, inf  ;;  %vm952_vm6 = vcmp.eq.f32.partialorder %v933_v6, 0.0  ;;  %v953_v22 = vand.u32 2147483648, %v933_v6 }
 0x4c9   : > { %1576 = vrsqrt.f32 %v939_v7  ;;  %vm971_vm7 = vcmp.eq.f32.partialorder %v939_v7, inf  ;;  %v974_v25 = vand.u32 2147483648, %v939_v7  ;;  %vm973_vm8 = vcmp.eq.f32.partialorder %v939_v7, 0.0 }
 0x4cb   : > { %v937_v8 = vpop.xlane.xlu1 %936 }
 0x4cc   : > { %1578 = vrsqrt.f32 %v937_v8  ;;  %v941_v9 = vpop.xlane.xlu0 %940  ;;  %vm964_vm9 = vcmp.eq.f32.partialorder %v937_v8, inf  ;;  %vm966_vm10 = vcmp.eq.f32.partialorder %v937_v8, 0.0  ;;  %v967_v34 = vand.u32 2147483648, %v937_v8 }
 0x4cd   : > { %1580 = vrsqrt.f32 %v941_v9  ;;  %vm978_vm11 = vcmp.eq.f32.partialorder %v941_v9, inf  ;;  %v981_v37 = vand.u32 2147483648, %v941_v9  ;;  %vm980_vm12 = vcmp.eq.f32.partialorder %v941_v9, 0.0 }
 0x4ce   : > { %v1573_v10 = vpop.eup %1572 }
 0x4cf   : > { %v956_v11 = vmul.f32 %v1573_v10, %v935_v5  ;;  %v943_v12 = vpop.xlane.xlu1 %942 }
 0x4d0   : > { %1582 = vrsqrt.f32 %v943_v12  ;;  %v2138_v14 = vpop.xlane.xlu0 %944  ;;  %vm985_vm13 = vcmp.eq.f32.partialorder %v943_v12, inf  ;;  %vm987_vm14 = vcmp.eq.f32.partialorder %v943_v12, 0.0  ;;  %v988_v47 = vand.u32 2147483648, %v943_v12 }
 0x4d1   : > { %v958_v15 = vsel %vm957_vm3, %v935_v5, %v956_v11  ;;  %1584 = vrsqrt.f32 %v2138_v14  ;;  %vm992_vm15 = vcmp.eq.f32.partialorder %v2138_v14, inf  ;;  %v995_v52 = vand.u32 2147483648, %v2138_v14 }
 0x4d2   : > { %v1575_v16 = vpop.eup %1574  ;;  %v961_v17 = vsel %vm959_vm4, %v960_v13, %v958_v15  ;;  %vm994_vm0 = vcmp.eq.f32.partialorder %v2138_v14, 0.0 }
 0x4d3   : > { %v1577_v18 = vpop.eup %1576  ;;  %v1005_v19 = vmax.f32 %v961_v17, 1e-12  ;;  %v949_v20 = vmul.f32 %v1575_v16, %v933_v6  ;;  %v2141_v21 = vpop.xlane.xlu1 %946 }
 0x4d4   : > { %v970_v23 = vmul.f32 %v1577_v18, %v939_v7  ;;  %1586 = vrsqrt.f32 %v2141_v21  ;;  %vm999_vm1 = vcmp.eq.f32.partialorder %v2141_v21, inf  ;;  %v1002_v3 = vand.u32 2147483648, %v2141_v21 }
 0x4d5   : > { %1588 = vrcp.f32 %v1005_v19  ;;  %v951_v24 = vsel %vm950_vm5, %v933_v6, %v949_v20  ;;  %vm1001_vm2 = vcmp.eq.f32.partialorder %v2141_v21, 0.0 }
 0x4d6   : > { %v1579_v26 = vpop.eup %1578  ;;  %v954_v27 = vsel %vm952_vm6, %v953_v22, %v951_v24  ;;  %v972_v28 = vsel %vm971_vm7, %v939_v7, %v970_v23 }
 0x4d7   : > { %v1581_v29 = vpop.eup %1580  ;;  %v1004_v30 = vmax.f32 %v954_v27, 1e-12  ;;  %v975_v31 = vsel %vm973_vm8, %v974_v25, %v972_v28  ;;  %v963_v32 = vmul.f32 %v1579_v26, %v937_v8 }
 0x4d8   : > { %v1007_v33 = vmax.f32 %v975_v31, 1e-12  ;;  %v977_v35 = vmul.f32 %v1581_v29, %v941_v9 }
 0x4d9   : > { %1590 = vrcp.f32 %v1004_v30  ;;  %v965_v36 = vsel %vm964_vm9, %v937_v8, %v963_v32 }
 0x4da   : > { %v1583_v38 = vpop.eup %1582  ;;  %1592 = vrcp.f32 %v1007_v33  ;;  %v968_v39 = vsel %vm966_vm10, %v967_v34, %v965_v36  ;;  %v979_v40 = vsel %vm978_vm11, %v941_v9, %v977_v35 }
 0x4db   : > { %v1585_v41 = vpop.eup %1584  ;;  %v1006_v42 = vmax.f32 %v968_v39, 1e-12  ;;  %v982_v43 = vsel %vm980_vm12, %v981_v37, %v979_v40  ;;  %v984_v44 = vmul.f32 %v1583_v38, %v943_v12 }
 0x4dc   : > { %v1008_v45 = vmax.f32 %v982_v43, 1e-12  ;;  %v991_v49 = vmul.f32 %v1585_v41, %v2138_v14 }
 0x4dd   : > { %1594 = vrcp.f32 %v1006_v42  ;;  %v986_v50 = vsel %vm985_vm13, %v943_v12, %v984_v44 }
 0x4de   : > { %v1587_v54 = vpop.eup %1586  ;;  %1596 = vrcp.f32 %v1008_v45  ;;  %v989_v55 = vsel %vm987_vm14, %v988_v47, %v986_v50  ;;  %v993_v56 = vsel %vm992_vm15, %v2138_v14, %v991_v49 }
 0x4df   : > { %v1589_v57 = vpop.eup %1588  ;;  %v1009_v60 = vmax.f32 %v989_v55, 1e-12  ;;  %v996_v61 = vsel %vm994_vm0, %v995_v52, %v993_v56  ;;  %v998_v62 = vmul.f32 %v1587_v54, %v2141_v21 }
 0x4e0   : > { %v1015_v63 = vmul.f32 %v1589_v57, %v2106_v46  ;;  %v1010_v2 = vmax.f32 %v996_v61, 1e-12 }
 0x4e1   : > { %1598 = vrcp.f32 %v1009_v60  ;;  %v1000_v4 = vsel %vm999_vm1, %v2141_v21, %v998_v62 }
 0x4e2   : > { %1029 = vst [vmem:[#allocation14 + $0x8] sm:$0xff] %v1015_v63  ;;  %1600 = vrcp.f32 %v1010_v2  ;;  %v1003_v5 = vsel %vm1001_vm2, %v1002_v3, %v1000_v4 }
 0x4e3   : > { %v1591_v6 = vpop.eup %1590  ;;  %v1011_v7 = vmax.f32 %v1003_v5, 1e-12 }
 0x4e4   : > { %v1593_v8 = vpop.eup %1592  ;;  %v1013_v9 = vmul.f32 %v1591_v6, %v2108_v48 }
 0x4e5   : > { %v1019_v46 = vmul.f32 %v1593_v8, %v2112_v51  ;;  %1602 = vrcp.f32 %v1011_v7 }
 0x4e6   : > { %1028 = vst [vmem:[#allocation14] sm:$0xff] %v1013_v9 }
 0x4e7   : > { %v1595_v10 = vpop.eup %1594  ;;  %1031 = vst [vmem:[#allocation14 + $0x18] sm:$0xff] %v1019_v46 }
 0x4e8   : > { %v1597_v11 = vpop.eup %1596  ;;  %v1017_v12 = vmul.f32 %v1595_v10, %v2114_v53 }
 0x4e9   : > { %v1021_v13 = vmul.f32 %v1597_v11, %v2120_v58 }
 0x4ea   : > { %1030 = vst [vmem:[#allocation14 + $0x10] sm:$0xff] %v1017_v12 }
 0x4eb   : > { %v1599_v14 = vpop.eup %1598  ;;  %1032 = vst [vmem:[#allocation14 + $0x20] sm:$0xff] %v1021_v13 }
 0x4ec   : > { %v1601_v15 = vpop.eup %1600  ;;  %v1023_v16 = vmul.f32 %v1599_v14, %v2122_v59 }
 0x4ed   : > { %v1025_v17 = vmul.f32 %v1601_v15, %v2128_v0 }
 0x4ee   : > { %1033 = vst [vmem:[#allocation14 + $0x28] sm:$0xff] %v1023_v16 }
 0x4ef   : > { %v1603_v48 = vpop.eup %1602  ;;  %1034 = vst [vmem:[#allocation14 + $0x30] sm:$0xff] %v1025_v17 }
 0x4f0   : > { %v1027_v51 = vmul.f32 %v1603_v48, %v2130_v1 }
 0x4f2   : > { %1035 = vst [vmem:[#allocation14 + $0x38] sm:$0xff] %v1027_v51 }
 0x4f3 PF: > { %p2164_p8 = scmp.eq.s32.totalorder %s1173_s24, 1  ;;  %s1850_s26 = smov [#allocation14]  }
 0x4f4   : > { %s1051_s27 = sshll.u32 %s1850_s26, 4  ;;  %s1052_s27 = int_to_ptr.vmem [resolvable:$true] %s1051_s27 }
 0x4f5   : > { %s1772_s8 = scalar_lea.vmem %s1052_s27, 1024  ;;  %s1778_s14 = scalar_lea.vmem %s1052_s27, 2048 }
 0x4f6   : > { %p1773_p9 = scmp.ne.s32.totalorder %s1052_s27, %s1772_s8  ;;  %p1779_p12 = scmp.lt.s32.totalorder %s1052_s27, %s1052_s27 }
 0x4f7   : > { %p1780_p13 = scmp.lt.s32.totalorder %s1778_s14, %s1772_s8 }
 0x4f8   : > { %p1774_p10 = pnand %p1773_p9, %p2164_p8 }
 0x4f9   : > { %p1781_p0 = por %p1780_p13, %p1779_p12 }
 0x4fa   : > { %p1775_p11 = pneg %p1774_p10 }
 0x4fc   : > { %p1782_p1 = pnand %p1781_p0, %p1775_p11 }
 0x4fe   : > { %1785 = shalt.err (!%p1782_p1)
}
 0x4ff   : > { %s1786_s9 = scalar_lea.hbm %s2204_s6, 1024 }
 0x500   : > { %p1787_p4 = scmp.ne.s32.totalorder %s2204_s6, %s1786_s9  ;;  %p1792_p6 = scmp.lt.u32.totalorder %s1786_s9, %s2204_s6 }
 0x502   : > { %p1788_p2 = pnand %p1787_p4, %p2164_p8 }
 0x504   : > { %p1789_p3 = pneg %p1788_p2 }
 0x506   : > { %p1794_p5 = pnand %p1792_p6, %p1789_p3 }
 0x508   : > { %1797 = shalt.err (!%p1794_p5)
}
 0x509   : > { %s1851_s13 = smov 128   ;;  %s1852_s15 = smov 8  }
 0x50a   : > { %1496 = dma.vmem_to_hbm [thread:$0]  (%p2164_p8), %s1052_s27, 1024, %s2204_s6, [#allocation5], %s1851_s13, %s1851_s13, %s1852_s15  }
 0x50b PF: > { %p1535_p7 = scmp.ge.s32.totalorder %s1840_s23, 2  ;;  %s2215_s16 = sadd.s32 4294967294, %s1840_s23  }
 0x50c   : > { %p1536_p9 = scmp.eq.s32.totalorder %s2215_s16, 1 }
 0x50e   : > { %p1519_p10 = pnand %p1536_p9, %p1535_p7 }
 0x510   : > { %1827 = dma.done.wait (!%p1519_p10), [#allocation5], 1024  }
 0x511   : > { %1829 = vsyncadd (!%p1519_p10), [#allocation5], 4294966272  ;;  %s23_s23 = sadd.s32 1, %s1840_s23   ;;  %s2216_s21 = smov %s1836_s22 }
 0x512   : > { %p20_p11 = scmp.ge.s32.totalorder %s23_s23, 4   ;;  %s2217_s22 = smov %s2219_s28 }
 0x514   :  { %22 = sbr.rel (!%p20_p11) target bundleno = 7 (0x7), region = 111 }
 0x51b   :  { %1072 = vsyncpa [#allocation4], 1 }
 0x51c   :  { %1074 = vsyncpa [#allocation4 + $0x1], 1 }
 0x51d   :  { %1075 = vsyncpa [#allocation7], 1 }
 0x51e   :  { %1076 = vsyncpa [#allocation10], 1 }
 0x51f   :  { %1077 = vsyncpa [#allocation13], 1 }
 0x520   :  { %1078 = vsyncpa [#allocation5], 1 }
 0x521   :  { %1080 = vsyncpa [#allocation5 + $0x1], 1 }

</bundles_post_ra>
